<compile_context>
chip_gen: v6e
topology: v6e:2x2x1
jax: 0.10.0
libtpu: 0.0.40
codegen_flags: <defaults>
</compile_context>

<pallas_src>
import functools

import jax
import jax.numpy as jnp
import numpy as np
from jax.experimental import pallas as pl
from jax.experimental.pallas import tpu as pltpu


def _fire_kernel(x_ref, ws_ref, bs_ref, wf_ref, bf_ref, out_ref):
    # x_ref:  (TB, L, Cin)        one batch block, NLC layout
    # ws_ref: (Cin, Csq)          squeeze 1x1 weight, pre-transposed (K, N)
    # bs_ref: (1, Csq)            squeeze bias
    # wf_ref: (3*Csq, Cout_pad)   fused expand weight; row groups = taps
    #                             [s[l-1] | s[l] | s[l+1]], cols = [e1 | e3 | 0pad]
    # bf_ref: (1, Cout_pad)       fused expand bias [b1 | b3 | 0pad]
    # out_ref:(TB, L, Cout_pad)
    tb, seq_len, cin = x_ref.shape
    csq = ws_ref.shape[1]
    cout_pad = wf_ref.shape[1]
    rows = tb * seq_len

    # --- squeeze: 1x1 conv == channel matmul, f32 accumulation, ReLU ---------
    x = x_ref[...].reshape(rows, cin)
    s = jnp.dot(x, ws_ref[...], preferred_element_type=jnp.float32) + bs_ref[...]
    s = jnp.maximum(s, 0.0)                       # (rows, Csq), f32
    s = s.astype(wf_ref.dtype)

    # --- shifted copies via XLU roll + boundary masks ------------------------
    # roll wraps across batch-segment boundaries; the masks re-impose the
    # Conv1d(padding=1) zero padding at l == 0 and l == L-1 of every element.
    pos = jax.lax.broadcasted_iota(jnp.int32, (rows, csq), 0) % seq_len
    zero = jnp.zeros_like(s)
    s_prev = jnp.where(pos == 0, zero, pltpu.roll(s, 1, axis=0))           # s[l-1]
    s_next = jnp.where(pos == seq_len - 1, zero, pltpu.roll(s, rows - 1, axis=0))  # s[l+1]
    s_cat = jnp.concatenate([s_prev, s, s_next], axis=-1)                  # (rows, 3*Csq)

    # --- single fused expand matmul: result is already [e1 | e3 | pad] -------
    out = jnp.dot(s_cat, wf_ref[...], preferred_element_type=jnp.float32)
    out = jnp.maximum(out + bf_ref[...], 0.0)                              # (rows, Cout_pad)
    out_ref[...] = out.reshape(tb, seq_len, cout_pad).astype(out_ref.dtype)


@functools.partial(jax.jit, static_argnames=("compute_dtype",))
def fire_module(x_ncl, ws, bs, w1, b1, w3, b3, *, compute_dtype=jnp.float32):
    """x_ncl: (N, Cin, L) float32, like the PyTorch module. Returns (N, Ce1+Ce3, L)."""
    n, cin, length = x_ncl.shape
    csq = ws.shape[0]
    ce1 = w1.shape[0]
    ce3 = w3.shape[0]
    cout = ce1 + ce3
    cout_pad = -(-cout // 128) * 128              # lane-dense output stores

    # NCL -> NLC so channels live on the lane axis.
    x_nlc = jnp.transpose(x_ncl, (0, 2, 1)).astype(compute_dtype)

    # Pre-transposed squeeze weight (no in-kernel .T).
    ws_t = ws.T.astype(compute_dtype)             # (Cin, Csq)
    bs_row = bs.reshape(1, csq).astype(jnp.float32)

    # Fused expand weight: tap k=0 pairs with s[l-1], k=1 with s[l], k=2 with s[l+1]
    # (PyTorch Conv1d padding=1).  e1 columns only under the center tap.
    wf = jnp.zeros((3 * csq, cout_pad), jnp.float32)
    wf = wf.at[0 * csq:1 * csq, ce1:cout].set(w3[:, :, 0].T)
    wf = wf.at[1 * csq:2 * csq, 0:ce1].set(w1.T)
    wf = wf.at[1 * csq:2 * csq, ce1:cout].set(w3[:, :, 1].T)
    wf = wf.at[2 * csq:3 * csq, ce1:cout].set(w3[:, :, 2].T)
    wf = wf.astype(compute_dtype)
    bf = jnp.zeros((1, cout_pad), jnp.float32)
    bf = bf.at[0, :cout].set(jnp.concatenate([b1, b3]).astype(jnp.float32))

    # Batch blocking: target ~1K matmul rows per grid step and keep the
    # double-buffered in/out blocks well inside scoped VMEM (v7x: 64 MiB phys).
    itemsize = jnp.dtype(compute_dtype).itemsize
    per_batch_bytes = 2 * length * (cin * itemsize + cout_pad * 4)  # dbl-buffered in+out
    budget_cap = max(1, (12 * 1024 * 1024) // max(per_batch_bytes, 1))
    rows_cap = max(1, 1024 // max(length, 1))
    cap = min(budget_cap, rows_cap)
    tb = 1
    for d in range(1, n + 1):
        if n % d == 0 and d <= cap:
            tb = d

    out_nlc = pl.pallas_call(
        _fire_kernel,
        out_shape=jax.ShapeDtypeStruct((n, length, cout_pad), jnp.float32),
        grid_spec=pltpu.PrefetchScalarGridSpec(
            num_scalar_prefetch=0,
            grid=(n // tb,),
            in_specs=[
                pl.BlockSpec((tb, length, cin), lambda b: (b, 0, 0)),
                pl.BlockSpec((cin, csq), lambda b: (0, 0)),            # resident
                pl.BlockSpec((1, csq), lambda b: (0, 0)),              # resident
                pl.BlockSpec((3 * csq, cout_pad), lambda b: (0, 0)),   # resident
                pl.BlockSpec((1, cout_pad), lambda b: (0, 0)),         # resident
            ],
            out_specs=pl.BlockSpec((tb, length, cout_pad), lambda b: (b, 0, 0)),
        ),
        compiler_params=pltpu.CompilerParams(
            dimension_semantics=("parallel",),
            vmem_limit_bytes=32 * 1024 * 1024,
        ),
    )(x_nlc, ws_t, bs_row, wf, bf)

    # Drop the lane padding, back to NCL.
    return jnp.transpose(out_nlc[:, :, :cout], (0, 2, 1))


def fire_module_ref(x_ncl, ws, bs, w1, b1, w3, b3):
    """Pure-JAX reference matching torch semantics (for correctness check)."""
    s = jnp.einsum("ncl,oc->nol", x_ncl, ws) + bs[None, :, None]
    s = jnp.maximum(s, 0.0)
    e1 = jnp.einsum("ncl,oc->nol", s, w1) + b1[None, :, None]
    e1 = jnp.maximum(e1, 0.0)
    s_pad = jnp.pad(s, ((0, 0), (0, 0), (1, 1)))
    L = x_ncl.shape[-1]
    e3 = sum(
        jnp.einsum("ncl,oc->nol", s_pad[:, :, k:k + L], w3[:, :, k])
        for k in range(3)
    ) + b3[None, :, None]
    e3 = jnp.maximum(e3, 0.0)
    return jnp.concatenate([e1, e3], axis=1)


if __name__ == "__main__":
    # Small, module-consistent shapes.
    N, C_IN, L = 2, 16, 16
    C_SQ, C_E1, C_E3 = 8, 16, 16

    key = jax.random.PRNGKey(0)
    ks = jax.random.split(key, 8)
    x = jax.random.normal(ks[0], (N, C_IN, L), dtype=jnp.float32)

    # Deterministic "init" of the conv parameters (synthetic, not a checkpoint).
    ws = jax.random.normal(ks[1], (C_SQ, C_IN), dtype=jnp.float32) * 0.2
    bs = jax.random.normal(ks[2], (C_SQ,), dtype=jnp.float32) * 0.1
    w1 = jax.random.normal(ks[3], (C_E1, C_SQ), dtype=jnp.float32) * 0.2
    b1 = jax.random.normal(ks[4], (C_E1,), dtype=jnp.float32) * 0.1
    w3 = jax.random.normal(ks[5], (C_E3, C_SQ, 3), dtype=jnp.float32) * 0.2
    b3 = jax.random.normal(ks[6], (C_E3,), dtype=jnp.float32) * 0.1

    out = jax.block_until_ready(fire_module(x, ws, bs, w1, b1, w3, b3))

    ref = fire_module_ref(x, ws, bs, w1, b1, w3, b3)
    assert out.shape == (N, C_E1 + C_E3, L), out.shape
    np.testing.assert_allclose(np.asarray(out), np.asarray(ref), rtol=1e-4, atol=1e-4)

    print("KERNEL_OK")
</pallas_src>

<mosaic_0001>
module attributes {stable_mosaic.version = 11 : i64} {
  func.func @_fire_kernel(%arg0: i32, %arg1: memref<2x16x16xf32, #tpu.memory_space<vmem>>, %arg2: memref<16x8xf32, #tpu.memory_space<vmem>>, %arg3: memref<1x8xf32, #tpu.memory_space<vmem>>, %arg4: memref<24x128xf32, #tpu.memory_space<vmem>>, %arg5: memref<1x128xf32, #tpu.memory_space<vmem>>, %arg6: memref<2x16x128xf32, #tpu.memory_space<vmem>>) attributes {dimension_semantics = [#tpu.dimension_semantics<parallel>], iteration_bounds = array<i64: 1>, scalar_prefetch = 0 : i64, scratch_operands = 0 : i64, tpu.core_type = #tpu.core_type<tc>, window_params = [{transform_indices = @transform_0, window_bounds = array<i64: 2, 16, 16>}, {pipeline_mode = #tpu.pipeline_mode<synchronous>, transform_indices = @transform_1, window_bounds = array<i64: 16, 8>}, {pipeline_mode = #tpu.pipeline_mode<synchronous>, transform_indices = @transform_2, window_bounds = array<i64: 1, 8>}, {pipeline_mode = #tpu.pipeline_mode<synchronous>, transform_indices = @transform_3, window_bounds = array<i64: 24, 128>}, {pipeline_mode = #tpu.pipeline_mode<synchronous>, transform_indices = @transform_4, window_bounds = array<i64: 1, 128>}, {transform_indices = @transform_5, window_bounds = array<i64: 2, 16, 128>}]} {
    %c0 = arith.constant 0 : index
    %c0_0 = arith.constant 0 : index
    %c0_1 = arith.constant 0 : index
    %0 = vector.load %arg1[%c0, %c0_0, %c0_1] : memref<2x16x16xf32, #tpu.memory_space<vmem>>, vector<2x16x16xf32>
    %1 = vector.shape_cast %0 : vector<2x16x16xf32> to vector<32x16xf32>
    %c0_2 = arith.constant 0 : index
    %c0_3 = arith.constant 0 : index
    %2 = vector.load %arg2[%c0_2, %c0_3] : memref<16x8xf32, #tpu.memory_space<vmem>>, vector<16x8xf32>
    %cst = arith.constant dense<0.000000e+00> : vector<32x8xf32>
    %3 = tpu.matmul %1, %2, %cst {dimension_numbers = #tpu.dot_dimension_numbers<[1], [0], [0], [1], [0, 0, 1, 1], [], []>} : vector<32x16xf32>, vector<16x8xf32>, vector<32x8xf32> -> vector<32x8xf32>
    %c0_4 = arith.constant 0 : index
    %c0_5 = arith.constant 0 : index
    %4 = vector.load %arg3[%c0_4, %c0_5] : memref<1x8xf32, #tpu.memory_space<vmem>>, vector<1x8xf32>
    %5 = vector.broadcast %4 : vector<1x8xf32> to vector<32x8xf32>
    %6 = arith.addf %3, %5 : vector<32x8xf32>
    %cst_6 = arith.constant 0.000000e+00 : f32
    %7 = vector.broadcast %cst_6 : f32 to vector<32x8xf32>
    %8 = arith.maximumf %6, %7 : vector<32x8xf32>
    %9 = tpu.iota {dimensions = array<i32: 0>} : vector<32x8xi32>
    %c16_i32 = arith.constant 16 : i32
    %c0_i32 = arith.constant 0 : i32
    %10 = arith.cmpi eq, %c16_i32, %c0_i32 : i32
    %c1_i32 = arith.constant 1 : i32
    %11 = arith.select %10, %c1_i32, %c16_i32 : i32
    %12 = vector.broadcast %11 : i32 to vector<32x8xi32>
    %13 = arith.remsi %9, %12 : vector<32x8xi32>
    %c0_i32_7 = arith.constant 0 : i32
    %14 = vector.broadcast %c0_i32_7 : i32 to vector<32x8xi32>
    %15 = arith.cmpi ne, %13, %14 : vector<32x8xi32>
    %c0_i32_8 = arith.constant 0 : i32
    %16 = vector.broadcast %c0_i32_8 : i32 to vector<32x8xi32>
    %17 = arith.cmpi slt, %13, %16 : vector<32x8xi32>
    %c0_i32_9 = arith.constant 0 : i32
    %18 = arith.cmpi slt, %11, %c0_i32_9 : i32
    %19 = vector.broadcast %18 : i1 to vector<32x8xi1>
    %20 = vector.broadcast %19 : vector<32x8xi1> to vector<32x8xi1>
    %21 = arith.xori %17, %20 : vector<32x8xi1>
    %22 = arith.andi %21, %15 : vector<32x8xi1>
    %23 = vector.broadcast %11 : i32 to vector<32x8xi32>
    %24 = arith.addi %13, %23 : vector<32x8xi32>
    %25 = arith.select %22, %24, %13 : vector<32x8xi1>, vector<32x8xi32>
    %cst_10 = arith.constant 0.000000e+00 : f32
    %26 = vector.broadcast %cst_10 : f32 to vector<32x8xf32>
    %c0_i32_11 = arith.constant 0 : i32
    %27 = vector.broadcast %c0_i32_11 : i32 to vector<32x8xi32>
    %28 = arith.cmpi eq, %25, %27 : vector<32x8xi32>
    %c1_i32_12 = arith.constant 1 : i32
    %29 = tpu.dynamic_rotate %8 by %c1_i32_12 dim 0 : vector<32x8xf32>, i32 -> vector<32x8xf32>
    %30 = arith.select %28, %26, %29 : vector<32x8xi1>, vector<32x8xf32>
    %c15_i32 = arith.constant 15 : i32
    %31 = vector.broadcast %c15_i32 : i32 to vector<32x8xi32>
    %32 = arith.cmpi eq, %25, %31 : vector<32x8xi32>
    %c31_i32 = arith.constant 31 : i32
    %33 = tpu.dynamic_rotate %8 by %c31_i32 dim 0 : vector<32x8xf32>, i32 -> vector<32x8xf32>
    %34 = arith.select %32, %26, %33 : vector<32x8xi1>, vector<32x8xf32>
    %35 = tpu.concatenate %30, %8, %34 in 1 : vector<32x8xf32>, vector<32x8xf32>, vector<32x8xf32> -> vector<32x24xf32>
    %c0_13 = arith.constant 0 : index
    %c0_14 = arith.constant 0 : index
    %36 = vector.load %arg4[%c0_13, %c0_14] : memref<24x128xf32, #tpu.memory_space<vmem>>, vector<24x128xf32>
    %cst_15 = arith.constant dense<0.000000e+00> : vector<32x128xf32>
    %37 = tpu.matmul %35, %36, %cst_15 {dimension_numbers = #tpu.dot_dimension_numbers<[1], [0], [0], [1], [0, 0, 1, 1], [], []>} : vector<32x24xf32>, vector<24x128xf32>, vector<32x128xf32> -> vector<32x128xf32>
    %c0_16 = arith.constant 0 : index
    %c0_17 = arith.constant 0 : index
    %38 = vector.load %arg5[%c0_16, %c0_17] : memref<1x128xf32, #tpu.memory_space<vmem>>, vector<1x128xf32>
    %39 = vector.broadcast %38 : vector<1x128xf32> to vector<32x128xf32>
    %40 = arith.addf %37, %39 : vector<32x128xf32>
    %cst_18 = arith.constant 0.000000e+00 : f32
    %41 = vector.broadcast %cst_18 : f32 to vector<32x128xf32>
    %42 = arith.maximumf %40, %41 : vector<32x128xf32>
    %43 = vector.shape_cast %42 : vector<32x128xf32> to vector<2x16x128xf32>
    %c0_19 = arith.constant 0 : index
    %c0_20 = arith.constant 0 : index
    %c0_21 = arith.constant 0 : index
    %44 = vector.load %arg6[%c0_19, %c0_20, %c0_21] : memref<2x16x128xf32, #tpu.memory_space<vmem>>, vector<2x16x128xf32>
    tpu.vector_store %arg6[%c0_19, %c0_20, %c0_21], %43 {strides = array<i32>} : memref<2x16x128xf32, #tpu.memory_space<vmem>>, vector<2x16x128xf32>,
    return
  }
  func.func @transform_0(%arg0: i32) -> (i32, i32, i32) {
    %c0_i32 = arith.constant 0 : i32
    %c0_i32_0 = arith.constant 0 : i32
    %c0_i32_1 = arith.constant 0 : i32
    return %arg0, %c0_i32, %c0_i32_0 : i32, i32, i32
  }
  func.func @transform_1(%arg0: i32) -> (i32, i32) {
    %c0_i32 = arith.constant 0 : i32
    %c0_i32_0 = arith.constant 0 : i32
    %c0_i32_1 = arith.constant 0 : i32
    return %c0_i32, %c0_i32_0 : i32, i32
  }
  func.func @transform_2(%arg0: i32) -> (i32, i32) {
    %c0_i32 = arith.constant 0 : i32
    %c0_i32_0 = arith.constant 0 : i32
    %c0_i32_1 = arith.constant 0 : i32
    return %c0_i32, %c0_i32_0 : i32, i32
  }
  func.func @transform_3(%arg0: i32) -> (i32, i32) {
    %c0_i32 = arith.constant 0 : i32
    %c0_i32_0 = arith.constant 0 : i32
    %c0_i32_1 = arith.constant 0 : i32
    return %c0_i32, %c0_i32_0 : i32, i32
  }
  func.func @transform_4(%arg0: i32) -> (i32, i32) {
    %c0_i32 = arith.constant 0 : i32
    %c0_i32_0 = arith.constant 0 : i32
    %c0_i32_1 = arith.constant 0 : i32
    return %c0_i32, %c0_i32_0 : i32, i32
  }
  func.func @transform_5(%arg0: i32) -> (i32, i32, i32) {
    %c0_i32 = arith.constant 0 : i32
    %c0_i32_0 = arith.constant 0 : i32
    %c0_i32_1 = arith.constant 0 : i32
    return %arg0, %c0_i32, %c0_i32_0 : i32, i32, i32
  }
}

</mosaic_0001>

<bundles_post_ra>
// kernel: fire_module.1
= control target key start
LH: loop header
LB: loop body
LE: loop exit
PB: predicated region body
PF: predicated region fallthrough
CT: control target
= control target key end

     0   :  { %vm33_vm0 = vcmask 130048   ;;  %v135_v8 = vlaneseq  ;;  %vm254_vm7 = vcmask 64512   ;;  %vm273_vm8 = vcmask 195584   ;;  %s539_s1 = inlined_call_operand.vmem [shape: f32[16,8], index: 1, kind: input, shape index: {}]   ;;  %s540_s0 = inlined_call_operand.vmem [shape: f32[2,16,16], index: 0, kind: input, shape index: {}]   ;;  %s541_s2 = inlined_call_operand.vmem [shape: f32[1,8], index: 2, kind: input, shape index: {}]   ;;  %s542_s3 = inlined_call_operand.vmem [shape: f32[24,128], index: 3, kind: input, shape index: {}]   ;;  %s543_s4 = inlined_call_operand.vmem [shape: f32[1,128], index: 4, kind: input, shape index: {}]   ;;  %s544_s5 = inlined_call_operand.vmem [shape: f32[2,16,128], index: 5, kind: output, shape index: {}]  }
   0x1   :  { %v25_v0 = vld [vmem:[%s539_s1 + $0x8] sm:$0xff]  ;;  %v24_v1 = vld [vmem:[%s539_s1] sm:$0xff]  ;;  %v22_v4 = vld [vmem:[%s540_s0 + $0x10] sm:$0xff] }
   0x2   :  { %v20_v2 = vld [vmem:[%s540_s0] sm:$0xff]  ;;  %406 = vmatprep.subr.mxu0 %v25_v0  ;;  %v21_v3 = vld [vmem:[%s540_s0 + $0x8] sm:$0xff]  ;;  %v23_v5 = vld [vmem:[%s540_s0 + $0x18] sm:$0xff]  ;;  %v136_v14 = vshrl.u32 %v135_v8, 7 }
   0x3   :  { %410 = vmatprep.mubr.msk.f32.mxu0 %vm33_vm0, %v20_v2  ;;  %407 = vmatpush3.msra.mxu0 %v25_v0  ;;  %v265_v6 = vld [vmem:[%s542_s3 + $0x10] sm:$0xff]  ;;  %v383_v7 = vld [vmem:[%s541_s2] ss:$0 sm:$0xff]  ;;  %v264_v10 = vld [vmem:[%s542_s3 + $0x8] sm:$0xff]  ;;  %s430_s2 = smov 8  }
   0x4   :  { %408 = vmatprep.subr.mxu0 %v24_v1  ;;  %416 = vmatprep.subr.mxu1 %v265_v6  ;;  %v263_v12 = vld [vmem:[%s542_s3] sm:$0xff]  ;;  %v138_v18 = vadd.s32 16, %v136_v14  ;;  %v137_v21 = vadd.s32 8, %v136_v14  ;;  %v144_v22 = vand.u32 15, %v136_v14  ;;  %v139_v24 = vadd.s32 24, %v136_v14  ;;  %s431_s3 = smov 16  }
   0x5   :  { %409 = vmatpush3.msra.mxu0 %v24_v1  ;;  %417 = vmatpush3.msra.mxu1 %v265_v6  ;;  %vm196_vm1 = vcmp.lt.s32.totalorder %v136_v14, 1  ;;  %vm213_vm2 = vcmp.lt.s32.totalorder %v136_v14, 7 }
   0x6   :  { %411 = vmatmul.mubr.msk.f32.vlgmr.msra.gmra.mxu0 %vm33_vm0, %v21_v3  ;;  %418 = vmatprep.subr.mxu1 %v264_v10  ;;  %v158_v30 = vand.u32 15, %v138_v18  ;;  %v151_v33 = vand.u32 15, %v137_v21  ;;  %vm496_vm3 = vcmp.eq.s32.totalorder %v144_v22, 0  ;;  %v165_v41 = vand.u32 15, %v139_v24 }
   0x7   :  { %413 = vmatprep.mubr.msk.f32.mxu0 %vm33_vm0, %v22_v4  ;;  %419 = vmatpush3.msra.mxu1 %v264_v10 }
   0x8   :  { %420 = vmatprep.subr.mxu1 %v263_v12  ;;  %vm505_vm4 = vcmp.eq.s32.totalorder %v158_v30, 0  ;;  %vm206_vm5 = vcmp.eq.s32.totalorder %v151_v33, 15  ;;  %vm208_vm6 = vcmp.eq.s32.totalorder %v165_v41, 15 }
   0x9   :  { %421 = vmatpush3.msra.mxu1 %v263_v12 }
   0xa   :  { %414 = vmatmul.mubr.msk.f32.gmra.mxu0 %vm33_vm0, %v23_v5  ;;  %v388_v5 = vld [vmem:[%s543_s4] ss:$0 sm:$0xff] }
  0xc6   :  { %v412_v9 = vpop.f32.mrf.mxu0 }
  0xc7   :  { %v118_v11 = vadd.f32 %v412_v9, %v383_v7 }
  0xc8   :  { %v112_v13 = vpop.f32.mrf.mxu0 }
  0xc9   :  { %v132_v15 = vmax.f32 %v118_v11, 0.0  ;;  %v113_v16 = vadd.f32 %v383_v7, %v112_v13 }
  0xca   :  { %v415_v17 = vpop.f32.mrf.mxu0 }
  0xcb   :  { %v131_v19 = vmax.f32 %v113_v16, 0.0  ;;  %v128_v20 = vadd.f32 %v415_v17, %v383_v7  ;;  %228 = vrot.lane.b32.xlu0 %v132_v15, %s430_s2  ;;  %v193_v28 = vrot.slane %v132_v15, 7  ;;  %v210_v35 = vrot.slane %v132_v15, 1 }
  0xcc   :  { %v122_v23 = vpop.f32.mrf.mxu0 }
  0xcd   :  { %v192_v25 = vrot.slane %v131_v19, 7  ;;  %v134_v26 = vmax.f32 %v128_v20, 0.0  ;;  %v123_v27 = vadd.f32 %v383_v7, %v122_v23  ;;  %v209_v29 = vrot.slane %v131_v19, 1 }
  0xcf   :  { %v195_v31 = vrot.slane %v134_v26, 7  ;;  %v133_v32 = vmax.f32 %v123_v27, 0.0  ;;  %232 = vrot.lane.b32.xlu1 %v134_v26, %s430_s2  ;;  %226 = vrot.lane.b32.xlu0 %v131_v19, %s430_s2  ;;  %v199_v36 = vsel %vm196_vm1, %v192_v25, %v193_v28  ;;  %v216_v40 = vsel %vm213_vm2, %v209_v29, %v210_v35 }
  0xd0   :  { %v212_v44 = vrot.slane %v134_v26, 1 }
  0xd1   :  { %v194_v37 = vrot.slane %v133_v32, 7  ;;  %v211_v38 = vrot.slane %v133_v32, 1  ;;  %v200_v39 = vsel %vm196_vm1, %v195_v31, %v192_v25 }
  0xd2   :  { %v201_v42 = vsel %vm496_vm3, 0.0, %v200_v39  ;;  %v217_v51 = vsel %vm213_vm2, %v212_v44, %v209_v29 }
  0xd3   :  { %230 = vrot.lane.b32.xlu0 %v133_v32, %s430_s2  ;;  %242 = vrot.lane.b32.xlu1 %v216_v40, %s431_s3  ;;  %v215_v45 = vsel %vm213_vm2, %v210_v35, %v211_v38  ;;  %v197_v46 = vsel %vm196_vm1, %v194_v37, %v195_v31  ;;  %v198_v47 = vsel %vm196_vm1, %v193_v28, %v194_v37  ;;  %v221_v52 = vsel %vm208_vm6, 0.0, %v217_v51 }
  0xd4   :  { %v203_v48 = vsel %vm505_vm4, 0.0, %v198_v47  ;;  %v214_v49 = vsel %vm213_vm2, %v211_v38, %v212_v44  ;;  %v219_v50 = vsel %vm206_vm5, 0.0, %v215_v45 }
  0xd7   :  { %246 = vrot.lane.b32.xlu0 %v214_v49, %s431_s3  ;;  %244 = vrot.lane.b32.xlu1 %v219_v50, %s431_s3 }
  0xdb   :  { %248 = vrot.lane.b32.xlu1 %v221_v52, %s431_s3 }
 0x13d   :  { %v229_v53 = vpop.permute.xlu0 %228 }
 0x13e   :  { %v256_v60 = vsel %vm254_vm7, %v199_v36, %v229_v53 }
 0x141   :  { %v233_v54 = vpop.permute.xlu1 %232  ;;  %v227_v55 = vpop.permute.xlu0 %226 }
 0x142   :  { %v255_v56 = vsel %vm254_vm7, %v201_v42, %v227_v55  ;;  %v258_v2 = vsel %vm254_vm7, %v197_v46, %v233_v54 }
 0x145   :  { %v231_v57 = vpop.permute.xlu0 %230  ;;  %v243_v58 = vpop.permute.xlu1 %242 }
 0x146   :  { %v259_v59 = vsel %vm33_vm0, %v255_v56, %v243_v58  ;;  %v257_v61 = vsel %vm254_vm7, %v203_v48, %v231_v57 }
 0x147   :  { %422 = vmatprep.mubr.msk.f32.mxu1 %vm273_vm8, %v259_v59 }
 0x149   :  { %v247_v62 = vpop.permute.xlu0 %246  ;;  %v245_v63 = vpop.permute.xlu1 %244 }
 0x14a   :  { %v261_v0 = vsel %vm33_vm0, %v257_v61, %v247_v62  ;;  %v260_v1 = vsel %vm33_vm0, %v256_v60, %v245_v63 }
 0x14b   :  { %423 = vmatmul.mubr.msk.f32.vlgmr.msra.gmra.mxu1 %vm273_vm8, %v260_v1 }
 0x14c   :  { %425 = vmatprep.mubr.msk.f32.mxu1 %vm273_vm8, %v261_v0 }
 0x14d   :  { %v249_v3 = vpop.permute.xlu1 %248 }
 0x14e   :  { %v262_v4 = vsel %vm33_vm0, %v258_v2, %v249_v3 }
 0x14f   :  { %426 = vmatmul.mubr.msk.f32.gmra.mxu1 %vm273_vm8, %v262_v4 }
 0x20b   :  { %v424_v6 = vpop.f32.mrf.mxu1 }
 0x20c   :  { %v358_v7 = vadd.f32 %v424_v6, %v388_v5 }
 0x20d   :  { %v352_v8 = vpop.f32.mrf.mxu1 }
 0x20e   :  { %v372_v9 = vmax.f32 %v358_v7, 0.0  ;;  %v353_v10 = vadd.f32 %v388_v5, %v352_v8 }
 0x20f   :  { %v427_v11 = vpop.f32.mrf.mxu1 }
 0x210   :  { %376 = vst [vmem:[%s544_s5 + $0x8] sm:$0xff] %v372_v9  ;;  %v371_v12 = vmax.f32 %v353_v10, 0.0  ;;  %v368_v13 = vadd.f32 %v427_v11, %v388_v5 }
 0x211   :  { %v362_v14 = vpop.f32.mrf.mxu1 }
 0x212   :  { %375 = vst [vmem:[%s544_s5] sm:$0xff] %v371_v12  ;;  %v374_v15 = vmax.f32 %v368_v13, 0.0  ;;  %v363_v16 = vadd.f32 %v388_v5, %v362_v14 }
 0x214   :  { %378 = vst [vmem:[%s544_s5 + $0x18] sm:$0xff] %v374_v15  ;;  %v373_v17 = vmax.f32 %v363_v16, 0.0 }
 0x216   :  { %377 = vst [vmem:[%s544_s5 + $0x10] sm:$0xff] %v373_v17 }

</bundles_post_ra>
